<compile_context>
chip_gen: v6e
topology: v6e:2x2x1
jax: 0.10.0
libtpu: 0.0.40
codegen_flags: <defaults>
</compile_context>

<pallas_src>
import jax
import jax.numpy as jnp
from jax.experimental import pallas as pl
from jax.experimental.pallas import tpu as pltpu

HIDDEN = 128     # fixed by the module definition
SUBLANE = 8
MAX_TB = 1024    # max batch tile (double-buffered working set is only a few MiB)


def _round_up(n, m):
    return (n + m - 1) // m * m


def _choose_tb(batch):
    """Batch-tile heuristic: one block for small batches, >=2 grid steps otherwise."""
    if batch <= 256:
        return batch                       # single block; block dims == full dims
    # >= 2 grid steps so both v7x TensorCores get work; tiles are 256-row multiples.
    tb = _round_up(-(-batch // 2), 256)
    return min(tb, MAX_TB)


# ---------------------------------------------------------------------------
# Kernel
# ---------------------------------------------------------------------------
def _ac_kernel(x_ref, w1_ref, b1_ref, w2_ref, b2_ref, wh_ref, bh_ref,
               hid_ref, heads_ref):
    """hidden = tanh(tanh(x@W1+b1)@W2+b2); heads = hidden @ Wh + bh (packed)."""
    mxu_dtype = w1_ref.dtype
    # Cast x to the MXU operand dtype in-kernel (x stays f32 in HBM).
    x = x_ref[...].astype(mxu_dtype)                               # (tb, in_dim)
    # Layer 1 (MXU, f32 accumulate) + bias/tanh in f32 (v5e-safe).
    h = jnp.dot(x, w1_ref[...], preferred_element_type=jnp.float32)
    h = jnp.tanh(h + b1_ref[...])                                  # (tb, 128) f32
    # Layer 2.
    y = jnp.dot(h.astype(mxu_dtype), w2_ref[...],
                preferred_element_type=jnp.float32)
    y = jnp.tanh(y + b2_ref[...])                                  # (tb, 128) f32
    hid_ref[...] = y.astype(hid_ref.dtype)
    # Fused heads: columns [0:action_dim]=actor_mean, [action_dim]=critic value,
    # remaining (<8) columns are zero padding.  Narrow 8-lane store (32 B/row).
    z = jnp.dot(y.astype(mxu_dtype), wh_ref[...],
                preferred_element_type=jnp.float32)
    heads_ref[...] = (z + bh_ref[...]).astype(heads_ref.dtype)


# ---------------------------------------------------------------------------
# Parameter packing (done once, outside the hot path)
# ---------------------------------------------------------------------------
def pack_params(params, mxu_dtype=jnp.bfloat16):
    """Pack raw params for the kernel.

    mxu_dtype: MXU operand dtype (default bf16; f32 accumulation either way).
    """
    w1 = params["w1"]
    in_dim = w1.shape[0]
    action_dim = params["actor_mean_w"].shape[1]
    head_w = _round_up(action_dim + 1, SUBLANE)        # e.g. 5 -> 8 columns

    # Pack actor_mean and critic into one narrow weight slab.
    wh = jnp.zeros((HIDDEN, head_w), jnp.float32)
    wh = wh.at[:, :action_dim].set(params["actor_mean_w"])
    wh = wh.at[:, action_dim].set(params["critic_w"][:, 0])
    bh = jnp.zeros((1, head_w), jnp.float32)
    bh = bh.at[:, :action_dim].set(params["actor_mean_b"])
    bh = bh.at[:, action_dim].set(params["critic_b"][:, 0])

    return {
        "w1": w1.astype(mxu_dtype),                      # natural (in_dim, 128)
        "b1": params["b1"].astype(jnp.float32),
        "w2": params["w2"].astype(mxu_dtype),
        "b2": params["b2"].astype(jnp.float32),
        "wh": wh.astype(mxu_dtype),
        "bh": bh,                                        # f32 (bias stays f32)
        "in_dim": in_dim,
        "action_dim": action_dim,
        "head_w": head_w,
    }


# ---------------------------------------------------------------------------
# Wrapper
# ---------------------------------------------------------------------------
def actor_critic_forward(x, packed, *, tb=None, hidden_dtype=jnp.float32):
    """Runs the fused trunk + heads.

    x: (B, obs_dim + context_dim) float array (kept in its natural dtype/width).
    Returns (hidden (B,128), actor_mean (B,action_dim), value (B,1)).
    `hidden` is exactly what the PyTorch module's forward() returns.
    """
    B, in_dim = x.shape
    assert in_dim == packed["in_dim"], "input feature dim mismatch"
    head_w = packed["head_w"]
    action_dim = packed["action_dim"]

    # Batch tile selection (no batch padding; boundary blocks are masked).
    if tb is None:
        tb = _choose_tb(B)
    if tb >= B:
        tb = B                            # single block: block dims == full dims
    else:
        tb = _round_up(tb, SUBLANE)       # multi-block tiles must be 8-aligned
        if tb >= B:
            tb = B
    grid = (pl.cdiv(B, tb),)

    hid, heads = pl.pallas_call(
        _ac_kernel,
        out_shape=(
            jax.ShapeDtypeStruct((B, HIDDEN), hidden_dtype),
            jax.ShapeDtypeStruct((B, head_w), jnp.float32),
        ),
        grid_spec=pl.GridSpec(
            grid=grid,
            in_specs=[
                pl.BlockSpec((tb, in_dim), lambda i: (i, 0)),       # x tile
                pl.BlockSpec((in_dim, HIDDEN), lambda i: (0, 0)),   # W1 (resident)
                pl.BlockSpec((1, HIDDEN), lambda i: (0, 0)),        # b1
                pl.BlockSpec((HIDDEN, HIDDEN), lambda i: (0, 0)),   # W2 (resident)
                pl.BlockSpec((1, HIDDEN), lambda i: (0, 0)),        # b2
                pl.BlockSpec((HIDDEN, head_w), lambda i: (0, 0)),   # packed heads W
                pl.BlockSpec((1, head_w), lambda i: (0, 0)),        # packed heads b
            ],
            out_specs=(
                pl.BlockSpec((tb, HIDDEN), lambda i: (i, 0)),
                pl.BlockSpec((tb, head_w), lambda i: (i, 0)),
            ),
        ),
        compiler_params=pltpu.CompilerParams(
            dimension_semantics=("parallel",),
        ),
    )(x, packed["w1"], packed["b1"], packed["w2"], packed["b2"],
      packed["wh"], packed["bh"])

    mean = heads[:, :action_dim]
    value = heads[:, action_dim:action_dim + 1]
    return hid, mean, value


# ---------------------------------------------------------------------------
# Parameter init (mirrors PyTorch default Linear init; weights stored (in,out))
# ---------------------------------------------------------------------------
def init_params(obs_dim, action_dim, context_dim, dtype=jnp.float32):
    in_dim = obs_dim + context_dim
    key = jax.random.PRNGKey(0)
    keys = jax.random.split(key, 8)

    def uniform_linear(kw, kb, fan_in, fan_out):
        bound = 1.0 / jnp.sqrt(jnp.asarray(fan_in, dtype))
        w = jax.random.uniform(kw, (fan_in, fan_out), dtype, -bound, bound)
        b = jax.random.uniform(kb, (1, fan_out), dtype, -bound, bound)
        return w, b

    w1, b1 = uniform_linear(keys[0], keys[1], in_dim, HIDDEN)
    w2, b2 = uniform_linear(keys[2], keys[3], HIDDEN, HIDDEN)
    wa, ba = uniform_linear(keys[4], keys[5], HIDDEN, action_dim)
    wc, bc = uniform_linear(keys[6], keys[7], HIDDEN, 1)
    return {
        "w1": w1, "b1": b1, "w2": w2, "b2": b2,
        "actor_mean_w": wa, "actor_mean_b": ba,
        "critic_w": wc, "critic_b": bc,
        "actor_log_std": jnp.zeros((action_dim,), dtype),
        # TODO(synk): torch.distributions.Normal construction/sampling in
        # get_action_dist has no Pallas equivalent; std = exp(actor_log_std)
        # is applied on the host from the `mean` head output.
    }


def _reference_forward(x, params):
    hp = jax.lax.Precision.HIGHEST
    h = jnp.tanh(jnp.dot(x, params["w1"], precision=hp) + params["b1"])
    h = jnp.tanh(jnp.dot(h, params["w2"], precision=hp) + params["b2"])
    mean = jnp.dot(h, params["actor_mean_w"], precision=hp) + params["actor_mean_b"]
    value = jnp.dot(h, params["critic_w"], precision=hp) + params["critic_b"]
    return h, mean, value


# ---------------------------------------------------------------------------
# Demo / correctness check
# ---------------------------------------------------------------------------
if __name__ == "__main__":
    obs_dim, context_dim, action_dim = 24, 8, 4
    in_dim = obs_dim + context_dim
    params = init_params(obs_dim, action_dim, context_dim)

    kx = jax.random.PRNGKey(0)
    x_small = jax.random.normal(jax.random.fold_in(kx, 1), (8, in_dim), jnp.float32)
    x_ragged = jax.random.normal(jax.random.fold_in(kx, 2), (300, in_dim), jnp.float32)

    # 1) f32 path, tiny batch (single-block grid) — strict check.
    packed_f32 = pack_params(params, jnp.float32)
    hid, mean, value = actor_critic_forward(x_small, packed_f32)
    hid = jax.block_until_ready(hid)
    ref_h, ref_m, ref_v = _reference_forward(x_small, params)
    assert hid.shape == (8, HIDDEN)
    assert jnp.allclose(hid, ref_h, atol=1e-4, rtol=1e-4), "hidden mismatch (f32)"
    assert jnp.allclose(mean, ref_m, atol=1e-4, rtol=1e-4), "actor_mean mismatch (f32)"
    assert jnp.allclose(value, ref_v, atol=1e-4, rtol=1e-4), "critic mismatch (f32)"

    # 2) f32 path, B=300 (2-step grid with a partial boundary block).
    hid2, mean2, value2 = actor_critic_forward(x_ragged, packed_f32)
    hid2 = jax.block_until_ready(hid2)
    ref_h2, ref_m2, ref_v2 = _reference_forward(x_ragged, params)
    assert hid2.shape == (300, HIDDEN)
    assert jnp.allclose(hid2, ref_h2, atol=1e-4, rtol=1e-4), "hidden mismatch (ragged)"
    assert jnp.allclose(mean2, ref_m2, atol=1e-4, rtol=1e-4), "mean mismatch (ragged)"
    assert jnp.allclose(value2, ref_v2, atol=1e-4, rtol=1e-4), "value mismatch (ragged)"

    # 3) default bf16 MXU-operand path (f32 accumulation + f32 tanh) — loose check.
    packed_bf16 = pack_params(params)  # default: bf16 weights
    hid3, mean3, value3 = actor_critic_forward(x_small, packed_bf16)
    hid3 = jax.block_until_ready(hid3)
    assert jnp.allclose(hid3, ref_h, atol=5e-2), "hidden mismatch (bf16)"
    assert jnp.allclose(mean3, ref_m, atol=5e-2), "mean mismatch (bf16)"
    assert jnp.allclose(value3, ref_v, atol=5e-2), "value mismatch (bf16)"

    print("KERNEL_OK")
</pallas_src>

<mosaic_0001>
module attributes {stable_mosaic.version = 11 : i64} {
  func.func @_ac_kernel(%arg0: i32, %arg1: memref<8x32xf32, #tpu.memory_space<vmem>>, %arg2: memref<32x128xf32, #tpu.memory_space<vmem>>, %arg3: memref<1x128xf32, #tpu.memory_space<vmem>>, %arg4: memref<128x128xf32, #tpu.memory_space<vmem>>, %arg5: memref<1x128xf32, #tpu.memory_space<vmem>>, %arg6: memref<128x8xf32, #tpu.memory_space<vmem>>, %arg7: memref<1x8xf32, #tpu.memory_space<vmem>>, %arg8: memref<8x128xf32, #tpu.memory_space<vmem>>, %arg9: memref<8x8xf32, #tpu.memory_space<vmem>>) attributes {dimension_semantics = [#tpu.dimension_semantics<parallel>], iteration_bounds = array<i64: 1>, scalar_prefetch = 0 : i64, scratch_operands = 0 : i64, tpu.core_type = #tpu.core_type<tc>, window_params = [{transform_indices = @transform_0, window_bounds = array<i64: 8, 32>}, {pipeline_mode = #tpu.pipeline_mode<synchronous>, transform_indices = @transform_1, window_bounds = array<i64: 32, 128>}, {pipeline_mode = #tpu.pipeline_mode<synchronous>, transform_indices = @transform_2, window_bounds = array<i64: 1, 128>}, {pipeline_mode = #tpu.pipeline_mode<synchronous>, transform_indices = @transform_3, window_bounds = array<i64: 128, 128>}, {pipeline_mode = #tpu.pipeline_mode<synchronous>, transform_indices = @transform_4, window_bounds = array<i64: 1, 128>}, {pipeline_mode = #tpu.pipeline_mode<synchronous>, transform_indices = @transform_5, window_bounds = array<i64: 128, 8>}, {pipeline_mode = #tpu.pipeline_mode<synchronous>, transform_indices = @transform_6, window_bounds = array<i64: 1, 8>}, {transform_indices = @transform_7, window_bounds = array<i64: 8, 128>}, {transform_indices = @transform_8, window_bounds = array<i64: 8, 8>}]} {
    %c0 = arith.constant 0 : index
    %c0_0 = arith.constant 0 : index
    %0 = vector.load %arg1[%c0, %c0_0] : memref<8x32xf32, #tpu.memory_space<vmem>>, vector<8x32xf32>
    %c0_1 = arith.constant 0 : index
    %c0_2 = arith.constant 0 : index
    %1 = vector.load %arg2[%c0_1, %c0_2] : memref<32x128xf32, #tpu.memory_space<vmem>>, vector<32x128xf32>
    %cst = arith.constant dense<0.000000e+00> : vector<8x128xf32>
    %2 = tpu.matmul %0, %1, %cst {dimension_numbers = #tpu.dot_dimension_numbers<[1], [0], [0], [1], [0, 0, 1, 1], [], []>} : vector<8x32xf32>, vector<32x128xf32>, vector<8x128xf32> -> vector<8x128xf32>
    %c0_3 = arith.constant 0 : index
    %c0_4 = arith.constant 0 : index
    %3 = vector.load %arg3[%c0_3, %c0_4] : memref<1x128xf32, #tpu.memory_space<vmem>>, vector<1x128xf32>
    %4 = vector.broadcast %3 : vector<1x128xf32> to vector<8x128xf32>
    %5 = arith.addf %2, %4 : vector<8x128xf32>
    %6 = math.tanh %5 : vector<8x128xf32>
    %c0_5 = arith.constant 0 : index
    %c0_6 = arith.constant 0 : index
    %7 = vector.load %arg4[%c0_5, %c0_6] : memref<128x128xf32, #tpu.memory_space<vmem>>, vector<128x128xf32>
    %cst_7 = arith.constant dense<0.000000e+00> : vector<8x128xf32>
    %8 = tpu.matmul %6, %7, %cst_7 {dimension_numbers = #tpu.dot_dimension_numbers<[1], [0], [0], [1], [0, 0, 1, 1], [], []>} : vector<8x128xf32>, vector<128x128xf32>, vector<8x128xf32> -> vector<8x128xf32>
    %c0_8 = arith.constant 0 : index
    %c0_9 = arith.constant 0 : index
    %9 = vector.load %arg5[%c0_8, %c0_9] : memref<1x128xf32, #tpu.memory_space<vmem>>, vector<1x128xf32>
    %10 = vector.broadcast %9 : vector<1x128xf32> to vector<8x128xf32>
    %11 = arith.addf %8, %10 : vector<8x128xf32>
    %12 = math.tanh %11 : vector<8x128xf32>
    %c0_10 = arith.constant 0 : index
    %c0_11 = arith.constant 0 : index
    %13 = vector.load %arg8[%c0_10, %c0_11] : memref<8x128xf32, #tpu.memory_space<vmem>>, vector<8x128xf32>
    tpu.vector_store %arg8[%c0_10, %c0_11], %12 {strides = array<i32>} : memref<8x128xf32, #tpu.memory_space<vmem>>, vector<8x128xf32>,
    %c0_12 = arith.constant 0 : index
    %c0_13 = arith.constant 0 : index
    %14 = vector.load %arg6[%c0_12, %c0_13] : memref<128x8xf32, #tpu.memory_space<vmem>>, vector<128x8xf32>
    %cst_14 = arith.constant dense<0.000000e+00> : vector<8x8xf32>
    %15 = tpu.matmul %12, %14, %cst_14 {dimension_numbers = #tpu.dot_dimension_numbers<[1], [0], [0], [1], [0, 0, 1, 1], [], []>} : vector<8x128xf32>, vector<128x8xf32>, vector<8x8xf32> -> vector<8x8xf32>
    %c0_15 = arith.constant 0 : index
    %c0_16 = arith.constant 0 : index
    %16 = vector.load %arg7[%c0_15, %c0_16] : memref<1x8xf32, #tpu.memory_space<vmem>>, vector<1x8xf32>
    %17 = vector.broadcast %16 : vector<1x8xf32> to vector<8x8xf32>
    %18 = arith.addf %15, %17 : vector<8x8xf32>
    %c0_17 = arith.constant 0 : index
    %c0_18 = arith.constant 0 : index
    %19 = vector.load %arg9[%c0_17, %c0_18] : memref<8x8xf32, #tpu.memory_space<vmem>>, vector<8x8xf32>
    tpu.vector_store %arg9[%c0_17, %c0_18], %18 {strides = array<i32>} : memref<8x8xf32, #tpu.memory_space<vmem>>, vector<8x8xf32>,
    return
  }
  func.func @transform_0(%arg0: i32) -> (i32, i32) {
    %c0_i32 = arith.constant 0 : i32
    %c0_i32_0 = arith.constant 0 : i32
    return %arg0, %c0_i32 : i32, i32
  }
  func.func @transform_1(%arg0: i32) -> (i32, i32) {
    %c0_i32 = arith.constant 0 : i32
    %c0_i32_0 = arith.constant 0 : i32
    %c0_i32_1 = arith.constant 0 : i32
    return %c0_i32, %c0_i32_0 : i32, i32
  }
  func.func @transform_2(%arg0: i32) -> (i32, i32) {
    %c0_i32 = arith.constant 0 : i32
    %c0_i32_0 = arith.constant 0 : i32
    %c0_i32_1 = arith.constant 0 : i32
    return %c0_i32, %c0_i32_0 : i32, i32
  }
  func.func @transform_3(%arg0: i32) -> (i32, i32) {
    %c0_i32 = arith.constant 0 : i32
    %c0_i32_0 = arith.constant 0 : i32
    %c0_i32_1 = arith.constant 0 : i32
    return %c0_i32, %c0_i32_0 : i32, i32
  }
  func.func @transform_4(%arg0: i32) -> (i32, i32) {
    %c0_i32 = arith.constant 0 : i32
    %c0_i32_0 = arith.constant 0 : i32
    %c0_i32_1 = arith.constant 0 : i32
    return %c0_i32, %c0_i32_0 : i32, i32
  }
  func.func @transform_5(%arg0: i32) -> (i32, i32) {
    %c0_i32 = arith.constant 0 : i32
    %c0_i32_0 = arith.constant 0 : i32
    %c0_i32_1 = arith.constant 0 : i32
    return %c0_i32, %c0_i32_0 : i32, i32
  }
  func.func @transform_6(%arg0: i32) -> (i32, i32) {
    %c0_i32 = arith.constant 0 : i32
    %c0_i32_0 = arith.constant 0 : i32
    %c0_i32_1 = arith.constant 0 : i32
    return %c0_i32, %c0_i32_0 : i32, i32
  }
  func.func @transform_7(%arg0: i32) -> (i32, i32) {
    %c0_i32 = arith.constant 0 : i32
    %c0_i32_0 = arith.constant 0 : i32
    return %arg0, %c0_i32 : i32, i32
  }
  func.func @transform_8(%arg0: i32) -> (i32, i32) {
    %c0_i32 = arith.constant 0 : i32
    %c0_i32_0 = arith.constant 0 : i32
    return %arg0, %c0_i32 : i32, i32
  }
}

</mosaic_0001>

<bundles_post_ra>
// kernel: tpu_custom_call.1
= control target key start
LH: loop header
LB: loop body
LE: loop exit
PB: predicated region body
PF: predicated region fallthrough
CT: control target
= control target key end

     0   :  { %14 = vsyncpa [#allocation3], 0  ;;  %s799_s0 = inlined_call_operand.vmem [shape: f32[8,32], index: 0, kind: input, shape index: {}]   ;;  %s800_s1 = inlined_call_operand.hbm [shape: f32[32,128], index: 1, kind: input, shape index: {}]   ;;  %s801_s2 = inlined_call_operand.vmem [shape: f32[1,128], index: 2, kind: input, shape index: {}]   ;;  %s802_s3 = inlined_call_operand.vmem [shape: f32[128,128], index: 3, kind: input, shape index: {}]   ;;  %s803_s4 = inlined_call_operand.hbm [shape: f32[1,128], index: 4, kind: input, shape index: {}]   ;;  %s804_s5 = inlined_call_operand.vmem [shape: f32[128,8], index: 5, kind: input, shape index: {}]   ;;  %s805_s6 = inlined_call_operand.vmem [shape: f32[1,8], index: 6, kind: input, shape index: {}]   ;;  %s806_s7 = inlined_call_operand.hbm [shape: f32[8,128], index: 7, kind: output, shape index: {0}]   ;;  %s807_s8 = inlined_call_operand.hbm [shape: f32[8,8], index: 8, kind: output, shape index: {1}]  }
   0x1   :  { %15 = vsyncpa [#allocation6], 0 }
   0x2   :  { %16 = vsyncpa [#allocation4], 0 }
   0x3   :  { %17 = vsyncpa [#allocation9], 0  ;;  %s587_s27 = smov [#allocation2]  }
   0x4   :  { %s25_s28 = sshll.u32 %s587_s27, 4  ;;  %s26_s28 = int_to_ptr.vmem [resolvable:$true] %s25_s28 }
   0x5   :  { %s507_s29 = scalar_lea.vmem %s26_s28, 512  ;;  %p512_p1 = scmp.lt.s32.totalorder %s26_s28, %s26_s28 }
   0x6   :  { %p508_p0 = scmp.ne.s32.totalorder %s26_s28, %s507_s29  ;;  %p513_p2 = scmp.lt.s32.totalorder %s507_s29, %s507_s29 }
   0x8   :  { %p514_p3 = por %p513_p2, %p512_p1 }
   0xa   :  { %p515_p4 = pnand %p514_p3, %p508_p0 }
   0xc   :  { %518 = shalt.err (!%p515_p4)
}
   0xd   :  { %s588_s30 = smov 128   ;;  %s589_s9 = smov 8  }
   0xe   :  { %31 = dma.hbm_to_vmem [thread:$0]  %s800_s1, 512, %s26_s28, [#allocation3], %s588_s30, %s588_s30, %s589_s9  }
   0xf   :  { %s590_s12 = smov [#allocation5]  }
  0x10   :  { %s42_s13 = sshll.u32 %s590_s12, 4  ;;  %s43_s13 = int_to_ptr.vmem [resolvable:$true] %s42_s13 }
  0x11   :  { %s527_s14 = scalar_lea.vmem %s43_s13, 16  ;;  %s531_s15 = scalar_lea.vmem %s43_s13, 32 }
  0x12   :  { %p528_p5 = scmp.ne.s32.totalorder %s43_s13, %s527_s14  ;;  %p532_p6 = scmp.lt.s32.totalorder %s43_s13, %s43_s13 }
  0x13   :  { %p533_p7 = scmp.lt.s32.totalorder %s531_s15, %s527_s14 }
  0x15   :  { %p534_p8 = por %p533_p7, %p532_p6 }
  0x17   :  { %p535_p9 = pnand %p534_p8, %p528_p5 }
  0x19   :  { %538 = shalt.err (!%p535_p9)
}
  0x1a   :  { %45 = dma.hbm_to_vmem [thread:$0]  %s803_s4, 16, %s43_s13, [#allocation6]  }
  0x1b   :  { %579 = dma.done.wait [#allocation3], 512  }
  0x1c   :  { %580 = vsyncadd [#allocation3], 4294966784 }
  0x1d   :  { %581 = dma.done.wait [#allocation6], 16  }
  0x1e   :  { %582 = vsyncadd [#allocation6], 4294967280  ;;  %v591_v0 = vmov 0.0   ;;  %vm592_vm0 = vmmov 0   ;;  %v60_v1 = vld [vmem:[#allocation2 + $0x18] sm:$0xff]  ;;  %v59_v2 = vld [vmem:[#allocation2 + $0x10] sm:$0xff] }
  0x1f   :  { %406 = vmatprep.subr.mxu0 %v591_v0  ;;  %414 = vmatprep.mubr.msk.f32.mxu0 %vm592_vm0, %v591_v0  ;;  %v158_v3 = vld [vmem:[%s802_s3 + $0x78] sm:$0xff]  ;;  %v58_v4 = vld [vmem:[#allocation2 + $0x8] sm:$0xff]  ;;  %v157_v5 = vld [vmem:[%s802_s3 + $0x70] sm:$0xff]  ;;  %vm68_vm1 = vcmask 261120   ;;  %s593_s30 = smov [#allocation7]  }
  0x20   :  { %417 = vmatprep.subr.mxu1 %v591_v0  ;;  %449 = vmatprep.mubr.msk.f32.mxu1 %vm592_vm0, %v591_v0  ;;  %v156_v6 = vld [vmem:[%s802_s3 + $0x68] sm:$0xff]  ;;  %v57_v7 = vld [vmem:[#allocation2] sm:$0xff]  ;;  %v154_v10 = vld [vmem:[%s802_s3 + $0x58] sm:$0xff]  ;;  %s339_s9 = sshll.u32 %s593_s30, 4  ;;  %s340_s9 = int_to_ptr.vmem [resolvable:$true] %s339_s9 }
  0x21   :  { %407 = vmatpush3.msra.mxu0 %v60_v1  ;;  %418 = vmatpush3.msra.mxu1 %v158_v3  ;;  %v56_v8 = vld [vmem:[%s799_s0] sm:$0xff]  ;;  %v153_v11 = vld [vmem:[%s802_s3 + $0x50] sm:$0xff]  ;;  %v152_v12 = vld [vmem:[%s802_s3 + $0x48] sm:$0xff]  ;;  %s539_s10 = scalar_lea.vmem %s340_s9, 128  ;;  %p544_p11 = scmp.lt.s32.totalorder %s340_s9, %s340_s9 }
  0x22   :  { %408 = vmatprep.subr.mxu0 %v591_v0  ;;  %419 = vmatprep.subr.mxu1 %v591_v0  ;;  %v155_v9 = vld [vmem:[%s802_s3 + $0x60] sm:$0xff]  ;;  %v150_v14 = vld [vmem:[%s802_s3 + $0x38] sm:$0xff]  ;;  %v149_v15 = vld [vmem:[%s802_s3 + $0x30] sm:$0xff]  ;;  %p540_p10 = scmp.ne.s32.totalorder %s340_s9, %s539_s10  ;;  %p545_p12 = scmp.lt.s32.totalorder %s539_s10, %s539_s10 }
  0x23   :  { %409 = vmatpush3.msra.mxu0 %v59_v2  ;;  %420 = vmatpush3.msra.mxu1 %v157_v5  ;;  %v151_v13 = vld [vmem:[%s802_s3 + $0x40] sm:$0xff]  ;;  %v148_v16 = vld [vmem:[%s802_s3 + $0x28] sm:$0xff]  ;;  %v146_v18 = vld [vmem:[%s802_s3 + $0x18] sm:$0xff] }
  0x24   :  { %410 = vmatprep.subr.mxu0 %v591_v0  ;;  %421 = vmatprep.subr.mxu1 %v591_v0  ;;  %v147_v17 = vld [vmem:[%s802_s3 + $0x20] sm:$0xff]  ;;  %v145_v19 = vld [vmem:[%s802_s3 + $0x10] sm:$0xff]  ;;  %v144_v20 = vld [vmem:[%s802_s3 + $0x8] sm:$0xff]  ;;  %p546_p13 = por %p545_p12, %p544_p11 }
  0x25   :  { %411 = vmatpush3.msra.mxu0 %v58_v4  ;;  %422 = vmatpush3.msra.mxu1 %v156_v6  ;;  %v143_v21 = vld [vmem:[%s802_s3] sm:$0xff]  ;;  %v253_v22 = vld [vmem:[%s804_s5 + $0x78] sm:$0xff]  ;;  %v252_v23 = vld [vmem:[%s804_s5 + $0x70] sm:$0xff] }
  0x26   :  { %412 = vmatprep.subr.mxu0 %v591_v0  ;;  %423 = vmatprep.subr.mxu1 %v591_v0  ;;  %v251_v24 = vld [vmem:[%s804_s5 + $0x68] sm:$0xff]  ;;  %v250_v25 = vld [vmem:[%s804_s5 + $0x60] sm:$0xff]  ;;  %v249_v26 = vld [vmem:[%s804_s5 + $0x58] sm:$0xff]  ;;  %p547_p0 = pnand %p546_p13, %p540_p10 }
  0x27   :  { %413 = vmatpush3.msra.mxu0 %v57_v7  ;;  %424 = vmatpush3.msra.mxu1 %v155_v9  ;;  %v248_v27 = vld [vmem:[%s804_s5 + $0x50] sm:$0xff]  ;;  %v247_v28 = vld [vmem:[%s804_s5 + $0x48] sm:$0xff]  ;;  %v363_v29 = vld [vmem:[%s801_s2] ss:$0 sm:$0xff] }
  0x28   :  { %415 = vmatmul.mubr.msk.f32.vlgmr.msra.gmra.mxu0 %vm68_vm1, %v56_v8  ;;  %425 = vmatprep.subr.mxu1 %v591_v0  ;;  %v246_v34 = vld [vmem:[%s804_s5 + $0x40] sm:$0xff]  ;;  %v245_v35 = vld [vmem:[%s804_s5 + $0x38] sm:$0xff]  ;;  %v244_v36 = vld [vmem:[%s804_s5 + $0x30] sm:$0xff] }
  0x29   :  { %452 = vmatprep.subr.mxu0 %v591_v0  ;;  %426 = vmatpush3.msra.mxu1 %v154_v10  ;;  %v243_v37 = vld [vmem:[%s804_s5 + $0x28] sm:$0xff]  ;;  %v242_v38 = vld [vmem:[%s804_s5 + $0x20] sm:$0xff]  ;;  %v241_v39 = vld [vmem:[%s804_s5 + $0x18] sm:$0xff] }
  0x2a   :  { %484 = vmatprep.mubr.msk.f32.mxu0 %vm592_vm0, %v591_v0  ;;  %427 = vmatprep.subr.mxu1 %v591_v0  ;;  %v240_v40 = vld [vmem:[%s804_s5 + $0x10] sm:$0xff]  ;;  %v239_v41 = vld [vmem:[%s804_s5 + $0x8] sm:$0xff]  ;;  %v238_v42 = vld [vmem:[%s804_s5] sm:$0xff] }
  0x2b   :  { %428 = vmatpush3.msra.mxu1 %v153_v11  ;;  %453 = vmatpush3.msra.mxu0 %v253_v22  ;;  %v365_v43 = vld [vmem:[#allocation5] ss:$0 sm:$0xff] }
  0x2c   :  { %429 = vmatprep.subr.mxu1 %v591_v0  ;;  %454 = vmatprep.subr.mxu0 %v591_v0 }
  0x2d   :  { %430 = vmatpush3.msra.mxu1 %v152_v12  ;;  %455 = vmatpush3.msra.mxu0 %v252_v23 }
  0x2e   :  { %431 = vmatprep.subr.mxu1 %v591_v0  ;;  %456 = vmatprep.subr.mxu0 %v591_v0 }
  0x2f   :  { %432 = vmatpush3.msra.mxu1 %v151_v13  ;;  %457 = vmatpush3.msra.mxu0 %v251_v24 }
  0x30   :  { %433 = vmatprep.subr.mxu1 %v591_v0  ;;  %458 = vmatprep.subr.mxu0 %v591_v0 }
  0x31   :  { %434 = vmatpush3.msra.mxu1 %v150_v14  ;;  %459 = vmatpush3.msra.mxu0 %v250_v25 }
  0x32   :  { %435 = vmatprep.subr.mxu1 %v591_v0  ;;  %460 = vmatprep.subr.mxu0 %v591_v0 }
  0x33   :  { %436 = vmatpush3.msra.mxu1 %v149_v15  ;;  %461 = vmatpush3.msra.mxu0 %v249_v26 }
  0x34   :  { %437 = vmatprep.subr.mxu1 %v591_v0  ;;  %462 = vmatprep.subr.mxu0 %v591_v0 }
  0x35   :  { %438 = vmatpush3.msra.mxu1 %v148_v16  ;;  %463 = vmatpush3.msra.mxu0 %v248_v27 }
  0x36   :  { %439 = vmatprep.subr.mxu1 %v591_v0  ;;  %464 = vmatprep.subr.mxu0 %v591_v0 }
  0x37   :  { %440 = vmatpush3.msra.mxu1 %v147_v17  ;;  %465 = vmatpush3.msra.mxu0 %v247_v28 }
  0x38   :  { %441 = vmatprep.subr.mxu1 %v591_v0  ;;  %466 = vmatprep.subr.mxu0 %v591_v0 }
  0x39   :  { %442 = vmatpush3.msra.mxu1 %v146_v18  ;;  %467 = vmatpush3.msra.mxu0 %v246_v34 }
  0x3a   :  { %443 = vmatprep.subr.mxu1 %v591_v0  ;;  %468 = vmatprep.subr.mxu0 %v591_v0 }
  0x3b   :  { %444 = vmatpush3.msra.mxu1 %v145_v19  ;;  %469 = vmatpush3.msra.mxu0 %v245_v35 }
  0x3c   :  { %445 = vmatprep.subr.mxu1 %v591_v0  ;;  %470 = vmatprep.subr.mxu0 %v591_v0 }
  0x3d   :  { %446 = vmatpush3.msra.mxu1 %v144_v20  ;;  %471 = vmatpush3.msra.mxu0 %v244_v36 }
  0x3e   :  { %447 = vmatprep.subr.mxu1 %v591_v0  ;;  %472 = vmatprep.subr.mxu0 %v591_v0 }
  0x3f   :  { %448 = vmatpush3.msra.mxu1 %v143_v21  ;;  %473 = vmatpush3.msra.mxu0 %v243_v37 }
  0x40   :  { %474 = vmatprep.subr.mxu0 %v591_v0 }
  0x41   :  { %475 = vmatpush3.msra.mxu0 %v242_v38 }
  0x42   :  { %476 = vmatprep.subr.mxu0 %v591_v0 }
  0x43   :  { %477 = vmatpush3.msra.mxu0 %v241_v39 }
  0x44   :  { %478 = vmatprep.subr.mxu0 %v591_v0 }
  0x45   :  { %479 = vmatpush3.msra.mxu0 %v240_v40 }
  0x46   :  { %480 = vmatprep.subr.mxu0 %v591_v0 }
  0x47   :  { %481 = vmatpush3.msra.mxu0 %v239_v41 }
  0x48   :  { %482 = vmatprep.subr.mxu0 %v591_v0 }
  0x49   :  { %483 = vmatpush3.msra.mxu0 %v238_v42 }
  0xe8   :  { %v138_v30 = vpop.f32.mrf.mxu0 }
  0xe9   :  { %v139_v31 = vadd.f32 %v363_v29, %v138_v30 }
  0xea   :  { %v416_v32 = vpop.f32.mrf.mxu0 }
  0xeb   :  { %495 = vtanh.f32 %v139_v31 }
  0xf8   :  { %v496_v33 = vpop.eup %495 }
  0xf9   :  { %450 = vmatmul.mubr.f32.vlgmr.msra.gmra.mxu1 %v496_v33 }
 0x1b9   :  { %v232_v44 = vpop.f32.mrf.mxu1 }
 0x1ba   :  { %v233_v45 = vadd.f32 %v365_v43, %v232_v44 }
 0x1bb   :  { %v451_v46 = vpop.f32.mrf.mxu1 }
 0x1bc   :  { %497 = vtanh.f32 %v233_v45 }
 0x1c9   :  { %v498_v47 = vpop.eup %497 }
 0x1ca   :  { %237 = vst [vmem:[#allocation7] sm:$0xff] %v498_v47  ;;  %485 = vmatmul.mubr.f32.vlgmr.msra.gmra.mxu0 %v498_v47 }
 0x1cb   :  { %550 = shalt.err (!%p547_p0)
}
 0x1cc   :  { %342 = dma.vmem_to_hbm [thread:$0]  %s340_s9, 128, %s806_s7, [#allocation4]   ;;  %v366_v48 = vld [vmem:[%s805_s6] ss:$0 sm:$0xff]  ;;  %vm331_vm2 = vcmask 64512  }
 0x1cd   :  { %s594_s14 = smov [#allocation8]  }
 0x1ce   :  { %s349_s15 = sshll.u32 %s594_s14, 4  ;;  %s350_s15 = int_to_ptr.vmem [resolvable:$true] %s349_s15 }
 0x1cf   :  { %s559_s16 = scalar_lea.vmem %s350_s15, 128  ;;  %p564_p2 = scmp.lt.s32.totalorder %s350_s15, %s350_s15 }
 0x1d0   :  { %p560_p1 = scmp.ne.s32.totalorder %s350_s15, %s559_s16  ;;  %p565_p3 = scmp.lt.s32.totalorder %s559_s16, %s559_s16 }
 0x1d2   :  { %p566_p4 = por %p565_p3, %p564_p2 }
 0x1d4   :  { %p567_p5 = pnand %p566_p4, %p560_p1 }
 0x28a   :  { %v327_v49 = vpop.f32.mrf.mxu0 }
 0x28b   :  { %v328_v50 = vadd.f32 %v366_v48, %v327_v49 }
 0x28c   :  { %v486_v51 = vpop.f32.mrf.mxu0 }
 0x28d   :  { %332 = vst.msk [vmem:[#allocation8] sm:$0xff] %vm331_vm2, %v328_v50 }
 0x28e   :  { %570 = shalt.err (!%p567_p5)
}
 0x28f   :  { %352 = dma.vmem_to_hbm [thread:$0]  %s350_s15, 128, %s807_s8, [#allocation9]  }
 0x290   :  { %583 = dma.done.wait [#allocation4], 128  }
 0x291   :  { %584 = vsyncadd [#allocation4], 4294967168 }
 0x292   :  { %585 = dma.done.wait [#allocation9], 128  }
 0x293   :  { %586 = vsyncadd [#allocation9], 4294967168 }
 0x294   :  { %359 = vsyncpa [#allocation3], 1 }
 0x295   :  { %360 = vsyncpa [#allocation6], 1 }
 0x296   :  { %361 = vsyncpa [#allocation4], 1 }
 0x297   :  { %362 = vsyncpa [#allocation9], 1 }

</bundles_post_ra>
